<compile_context>
chip_gen: v5e
topology: v5e:2x2
jax: 0.10.0
libtpu: 0.0.40
codegen_flags: <defaults>
</compile_context>

<pallas_src>
import jax
import jax.numpy as jnp
from jax.experimental import pallas as pl
from jax.experimental.pallas import tpu as pltpu


def _round_up(x, m):
    return ((x + m - 1) // m) * m


def _box_predictor_kernel(x_ref, w_ref, b_ref, out_ref):
    """One ROI tile: single fused matmul over the full feature dim + bias."""
    out_ref[...] = (
        jnp.dot(x_ref[...], w_ref[...], preferred_element_type=jnp.float32)
        + b_ref[...]
    ).astype(out_ref.dtype)


def fast_rcnn_predictor(roi_feats, w_cls, b_cls, w_bbox, b_bbox, *,
                        tile_r=128, compute_dtype=None):
    """FastRCNNPredictor forward: returns (cls_scores, bbox_deltas).

    roi_feats: [R, F]   (output of TwoMLPHead, F = representation size)
    w_cls:     [F, n_class]        b_cls:  [n_class] or [1, n_class]
    w_bbox:    [F, 4*n_class]      b_bbox: [4*n_class] or [1, 4*n_class]
    compute_dtype: optional (e.g. jnp.bfloat16) for the matmul operands;
                   accumulation, bias add and outputs stay f32.
    """
    R, F = roi_feats.shape
    n_class = w_cls.shape[1]
    n_box = w_bbox.shape[1]
    n_out = n_class + n_box
    # Lane-dense fused output width (>= 128, multiple of 128).
    n_pad = _round_up(max(n_out, 128), 128)

    # Fuse the two heads and pad the output dim to a full lane width.
    w = jnp.concatenate([w_cls, w_bbox], axis=1)                       # [F, n_out]
    b = jnp.concatenate([b_cls.reshape(1, -1),
                         b_bbox.reshape(1, -1)], axis=1)               # [1, n_out]
    if n_pad != n_out:
        w = jnp.pad(w, ((0, 0), (0, n_pad - n_out)))
        b = jnp.pad(b, ((0, 0), (0, n_pad - n_out)))
    b = b.astype(jnp.float32)

    x = roi_feats
    if compute_dtype is not None:
        x = x.astype(compute_dtype)
        w = w.astype(compute_dtype)

    # ROI tiling: sublane-aligned tile, clamped to (padded) R for tiny batches.
    tr = min(tile_r, _round_up(R, 8))
    R_pad = _round_up(R, tr)
    if R_pad != R:
        x = jnp.pad(x, ((0, R_pad - R), (0, 0)))

    out = pl.pallas_call(
        _box_predictor_kernel,
        out_shape=jax.ShapeDtypeStruct((R_pad, n_pad), jnp.float32),
        grid_spec=pltpu.PrefetchScalarGridSpec(
            num_scalar_prefetch=0,
            grid=(R_pad // tr,),
            in_specs=[
                pl.BlockSpec((tr, F), lambda i: (i, 0)),     # ROI feature tile
                pl.BlockSpec((F, n_pad), lambda i: (0, 0)),  # fused weights
                pl.BlockSpec((1, n_pad), lambda i: (0, 0)),  # fused bias
            ],
            out_specs=pl.BlockSpec((tr, n_pad), lambda i: (i, 0)),
        ),
        compiler_params=pltpu.CompilerParams(
            dimension_semantics=("parallel",),  # ROI axis: megacore-shardable
        ),
    )(x, w, b)

    cls_scores = out[:R, :n_class]
    bbox_deltas = out[:R, n_class:n_out]
    return cls_scores, bbox_deltas


if __name__ == "__main__":
    n_feature = 1024   # representation size fed to FastRCNNPredictor
    n_class = 4        # as in Net(n_feature=1024, n_class=4)

    key = jax.random.PRNGKey(0)
    k0, k1, k2 = jax.random.split(key, 3)

    # Deterministic init mirroring FastRCNNPredictor: small normal weights,
    # zero biases.  Stored as [in, out] for the row-major matmul layout above.
    w_cls = 0.01 * jax.random.normal(k1, (n_feature, n_class), dtype=jnp.float32)
    b_cls = jnp.zeros((1, n_class), dtype=jnp.float32)
    w_bbox = 0.001 * jax.random.normal(k2, (n_feature, 4 * n_class), dtype=jnp.float32)
    b_bbox = jnp.zeros((1, 4 * n_class), dtype=jnp.float32)

    # Realistic roi_heads batch: 512 proposals (exercises the R-tiled,
    # parallel grid).  Simulated output of TwoMLPHead in the real model.
    num_rois = 512
    roi_feats = jax.random.normal(k0, (num_rois, n_feature), dtype=jnp.float32)

    cls_scores, bbox_deltas = fast_rcnn_predictor(
        roi_feats, w_cls, b_cls, w_bbox, b_bbox, tile_r=128)
    jax.block_until_ready((cls_scores, bbox_deltas))

    ref_cls = roi_feats @ w_cls + b_cls
    ref_bbox = roi_feats @ w_bbox + b_bbox
    assert cls_scores.shape == (num_rois, n_class)
    assert bbox_deltas.shape == (num_rois, 4 * n_class)
    assert jnp.allclose(cls_scores, ref_cls, atol=1e-4, rtol=1e-4)
    assert jnp.allclose(bbox_deltas, ref_bbox, atol=1e-4, rtol=1e-4)

    # Tiny-batch path (tile clamped to R, single grid step) also checked.
    small_feats = roi_feats[:16]
    cls_s, bbox_s = fast_rcnn_predictor(
        small_feats, w_cls, b_cls, w_bbox, b_bbox, tile_r=128)
    jax.block_until_ready((cls_s, bbox_s))
    assert jnp.allclose(cls_s, small_feats @ w_cls + b_cls, atol=1e-4, rtol=1e-4)
    assert jnp.allclose(bbox_s, small_feats @ w_bbox + b_bbox, atol=1e-4, rtol=1e-4)

    print("KERNEL_OK")
</pallas_src>

<mosaic_0001>
module attributes {stable_mosaic.version = 11 : i64} {
  func.func @_box_predictor_kernel(%arg0: i32, %arg1: memref<128x1024xf32, #tpu.memory_space<vmem>>, %arg2: memref<1024x128xf32, #tpu.memory_space<vmem>>, %arg3: memref<1x128xf32, #tpu.memory_space<vmem>>, %arg4: memref<128x128xf32, #tpu.memory_space<vmem>>) attributes {dimension_semantics = [#tpu.dimension_semantics<parallel>], iteration_bounds = array<i64: 4>, scalar_prefetch = 0 : i64, scratch_operands = 0 : i64, tpu.core_type = #tpu.core_type<tc>, window_params = [{transform_indices = @transform_0, window_bounds = array<i64: 128, 1024>}, {pipeline_mode = #tpu.pipeline_mode<synchronous>, transform_indices = @transform_1, window_bounds = array<i64: 1024, 128>}, {pipeline_mode = #tpu.pipeline_mode<synchronous>, transform_indices = @transform_2, window_bounds = array<i64: 1, 128>}, {transform_indices = @transform_3, window_bounds = array<i64: 128, 128>}]} {
    %c0 = arith.constant 0 : index
    %c0_0 = arith.constant 0 : index
    %0 = vector.load %arg1[%c0, %c0_0] : memref<128x1024xf32, #tpu.memory_space<vmem>>, vector<128x1024xf32>
    %c0_1 = arith.constant 0 : index
    %c0_2 = arith.constant 0 : index
    %1 = vector.load %arg2[%c0_1, %c0_2] : memref<1024x128xf32, #tpu.memory_space<vmem>>, vector<1024x128xf32>
    %cst = arith.constant dense<0.000000e+00> : vector<128x128xf32>
    %2 = tpu.matmul %0, %1, %cst {dimension_numbers = #tpu.dot_dimension_numbers<[1], [0], [0], [1], [0, 0, 1, 1], [], []>} : vector<128x1024xf32>, vector<1024x128xf32>, vector<128x128xf32> -> vector<128x128xf32>
    %c0_3 = arith.constant 0 : index
    %c0_4 = arith.constant 0 : index
    %3 = vector.load %arg3[%c0_3, %c0_4] : memref<1x128xf32, #tpu.memory_space<vmem>>, vector<1x128xf32>
    %4 = vector.broadcast %3 : vector<1x128xf32> to vector<128x128xf32>
    %5 = arith.addf %2, %4 : vector<128x128xf32>
    %c0_5 = arith.constant 0 : index
    %c0_6 = arith.constant 0 : index
    %6 = vector.load %arg4[%c0_5, %c0_6] : memref<128x128xf32, #tpu.memory_space<vmem>>, vector<128x128xf32>
    tpu.vector_store %arg4[%c0_5, %c0_6], %5 {strides = array<i32>} : memref<128x128xf32, #tpu.memory_space<vmem>>, vector<128x128xf32>,
    return
  }
  func.func @transform_0(%arg0: i32) -> (i32, i32) {
    %c0_i32 = arith.constant 0 : i32
    %c0_i32_0 = arith.constant 0 : i32
    return %arg0, %c0_i32 : i32, i32
  }
  func.func @transform_1(%arg0: i32) -> (i32, i32) {
    %c0_i32 = arith.constant 0 : i32
    %c0_i32_0 = arith.constant 0 : i32
    %c0_i32_1 = arith.constant 0 : i32
    return %c0_i32, %c0_i32_0 : i32, i32
  }
  func.func @transform_2(%arg0: i32) -> (i32, i32) {
    %c0_i32 = arith.constant 0 : i32
    %c0_i32_0 = arith.constant 0 : i32
    %c0_i32_1 = arith.constant 0 : i32
    return %c0_i32, %c0_i32_0 : i32, i32
  }
  func.func @transform_3(%arg0: i32) -> (i32, i32) {
    %c0_i32 = arith.constant 0 : i32
    %c0_i32_0 = arith.constant 0 : i32
    return %arg0, %c0_i32 : i32, i32
  }
}

</mosaic_0001>

<bundles_post_ra>
// kernel: tpu_custom_call.1
= control target key start
LH: loop header
LB: loop body
LE: loop exit
PB: predicated region body
PF: predicated region fallthrough
CT: control target
= control target key end

     0   :  { %8 = vsyncpa [#allocation3], 0  ;;  %s1770_s0 = inlined_call_operand.hbm [shape: f32[512,1024], index: 0, kind: input, shape index: {}]   ;;  %s1771_s1 = inlined_call_operand.hbm [shape: f32[1024,128], index: 1, kind: input, shape index: {}]   ;;  %s1772_s2 = inlined_call_operand.hbm [shape: f32[1,128], index: 2, kind: input, shape index: {}]   ;;  %s1773_s3 = inlined_call_operand.hbm [shape: f32[512,128], index: 3, kind: output, shape index: {}]  }
   0x1   :  { %10 = vsyncpa [#allocation3 + $0x1], 0 }
   0x2   :  { %11 = vsyncpa [#allocation6], 0 }
   0x3   :  { %12 = vsyncpa [#allocation4], 0 }
   0x4   :  { %14 = vsyncpa [#allocation4 + $0x1], 0  ;;  %s1415_s12 = smov 0   ;;  %s1417_s13 = smov 0  }
   0x5   :  { %s1419_s14 = smov 0   ;;  %s1421_s15 = smov 0  }
   0x6 LB: > { %s1436_s16 = sadd.s32 4294967295, %s1385_s15   ;;  %s1129_s17 = sadd.s32 4294967294, %s1385_s15   ;;  %s1385_s15 = sphi %s1421_s15, %s1782_s15   ;;  %s1381_s14 = sphi %s1419_s14, %s1781_s14   ;;  %s1377_s13 = sphi %s1417_s13, %s1780_s13   ;;  %s1373_s12 = sphi %s1415_s12, %s1779_s12  }
   0x7   : > { %p40_p0 = scmp.ne.s32.totalorder %s1377_s13, %s1373_s12  ;;  %p41_p1 = scmp.eq.s32.totalorder %s1436_s16, 0 }
   0x8   : > { %p106_p2 = scmp.eq.s32.totalorder %s1436_s16, 3  ;;  %p112_p3 = scmp.eq.s32.totalorder %s1129_s17, 3 }
   0x9   : > { %p1445_p4 = por %p41_p1, %p40_p0  ;;  %p1130_p5 = scmp.ge.s32.totalorder %s1385_s15, 1 }
   0xa   : > { %p1450_p6 = por %p112_p3, %p40_p0  ;;  %p119_p7 = scmp.lt.s32.totalorder %s1385_s15, 5 }
   0xb   : > { %s130_s22 = sshll.u32 %s1771_s1, 4  ;;  %s1387_s24 = smov [#allocation5]   ;;  %s131_s22 = int_to_ptr.hbm [resolvable:$true] %s130_s22 }
   0xc   : > { %p1458_p8 = pnand %p1130_p5, %p119_p7  ;;  %s132_s25 = sshll.u32 %s1387_s24, 4  ;;  %s133_s25 = int_to_ptr.vmem [resolvable:$true] %s132_s25 }
   0xd   : > { %s145_s28 = sshll.u32 %s1772_s2, 4  ;;  %s1388_s29 = smov 128   ;;  %s146_s28 = int_to_ptr.hbm [resolvable:$true] %s145_s28 }
   0xe   : > { %p1163_p9 = pneg %p1458_p8  ;;  %s1389_s30 = smov 8  }
   0xf   : > { %s1390_s4 = smov [#allocation7]   ;;  %s1470_s6 = sadd.s32 1, %s1385_s15  }
  0x10   : > { %p1164_p10 = pnand %p1163_p9, %p41_p1  ;;  %s147_s5 = sshll.u32 %s1390_s4, 4  ;;  %s148_s5 = int_to_ptr.vmem [resolvable:$true] %s147_s5 }
  0x11   : > { %s27_s7 = sadd.s32 1, %s1381_s14  ;;  %s24_s8 = ssub.s32 %s1385_s15, %s1470_s6 }
  0x12   : > { %1166 = dma.hbm_to_vmem [thread:$0]  (!%p1164_p10), %s131_s22, 16384, %s133_s25, [#allocation6], %s1388_s29, %s1388_s29, %s1389_s30  }
  0x13   : > { %1169 = dma.hbm_to_vmem [thread:$0]  (!%p1164_p10), %s146_s28, 16, %s148_s5, [#allocation6]  }
  0x14   : > { %p34_p11 = scmp.ne.s32.totalorder %s1381_s14, %s1377_s13  ;;  %p25_p12 = scmp.eq.s32.totalorder %s24_s8, 0 }
  0x15   : > { %p35_p13 = scmp.eq.s32.totalorder %s1385_s15, 0  ;;  %p1180_p3 = scmp.lt.s32.totalorder %s1385_s15, 4 }
  0x16   : > { %p1480_p0 = por %p106_p2, %p34_p11  ;;  %s158_s11 = sand.u32 1, %s1381_s14  }
  0x17   : > { %s1486_s10 = scalar_select %p25_p12, %s1381_s14, %s27_s7  }
  0x18   : > { %p36_p5 = por %p35_p13, %p34_p11  ;;  %s1134_s17 = sshll.u32 %s158_s11, 10 }
  0x19   : > { %s1149_s20 = sshll.u32 %s1385_s15, 10  ;;  %s162_s25 = scalar_lea.vmem [#allocation2], %s1134_s17 }
  0x1a   : > { %s168_s24 = scalar_lea.hbm %s1770_s0, %s1149_s20  ;;  %s171_s26 = sshll.u32 %s162_s25, 4  ;;  %s172_s26 = int_to_ptr.vmem [resolvable:$true] %s171_s26 }
  0x1b   : > { %s169_s27 = sshll.u32 %s168_s24, 4  ;;  %p1493_p2 = pnand %p1180_p3, %p36_p5  ;;  %s170_s27 = int_to_ptr.hbm [resolvable:$true] %s169_s27 }
  0x1c   : > { %s159_s29 = scalar_lea.sflag [#allocation3], %s158_s11  ;;  %s1285_s30 = sshra.s32 %s170_s27, 4  ;;  %s1286_s30 = int_to_ptr.hbm [resolvable:$true] %s1285_s30 }
  0x1d   : > { %s1287_s4 = scalar_lea.hbm %s1286_s30, 1024  ;;  %p1289_p9 = pneg %p1493_p2 }
  0x1e   : > { %p1288_p7 = scmp.ne.s32.totalorder %s1286_s30, %s1287_s4  ;;  %s1292_s8 = scalar_lea.hbm %s1770_s0, 4096 }
  0x1f   : > { %p1293_p12 = scmp.lt.s32.totalorder %s1286_s30, %s1770_s0  ;;  %p1294_p13 = scmp.lt.s32.totalorder %s1292_s8, %s1287_s4 }
  0x20   : > { %p1290_p10 = pnand %p1289_p9, %p1288_p7 }
  0x21   : > { %p1295_p3 = por %p1294_p13, %p1293_p12 }
  0x22   : > { %p1291_p11 = pneg %p1290_p10 }
  0x24   : > { %p1296_p5 = pnand %p1295_p3, %p1291_p11 }
  0x26   : > { %1299 = shalt.err (!%p1296_p5)
}
  0x27   : > { %s1391_s11 = smov 1024   ;;  %s1392_s21 = smov 64  }
  0x28   : > { %1173 = dma.hbm_to_vmem [thread:$0]  (!%p1493_p2), %s170_s27, 16384, %s172_s26, %s159_s29, %s1391_s11, %s1391_s11, %s1392_s21  }
  0x29   : > { %183 = sbr.rel (%p1458_p8) target bundleno = 471 (0x1d7), region = 32  ;;  %s1510_s22 = sand.u32 (!%p1458_p8), 1, %s1377_s13  }
  0x2a   : > { %s1139_s24 = sshll.u32 (!%p1458_p8), %s1510_s22, 10  ;;  %s186_s25 = scalar_lea.sflag (!%p1458_p8), [#allocation3], %s1510_s22 }
  0x2b   : > { %s1514_s30 = scalar_lea.vmem (!%p1458_p8), [#allocation2], %s1139_s24 }
  0x2e   : > { %1360 = dma.done.wait (%p1445_p4), %s186_s25, 16384  }
  0x2f   : > { %1362 = vsyncadd (%p1445_p4), %s186_s25, 4294950912 }
  0x30   : > { %1364 = dma.done.wait (%p41_p1), [#allocation6], 16400  }
  0x31   : > { %1366 = vsyncadd (%p41_p1), [#allocation6], 4294950896  ;;  %v368_v0 = vld [vmem:[#allocation5 + $0x78] sm:$0xff]  ;;  %v367_v2 = vld [vmem:[#allocation5 + $0x70] sm:$0xff]  ;;  %s1142_s18 = sshll.u32 %s1510_s22, 7  ;;  %s1150_s26 = sshll.u32 %s1436_s16, 7 }
  0x32   : > { %v400_v1 = vld [vmem:[#allocation5 + $0x178] sm:$0xff]  ;;  %485 = vmatpush.msra.mxu0 %v368_v0  ;;  %v399_v4 = vld [vmem:[#allocation5 + $0x170] sm:$0xff]  ;;  %v366_v6 = vld [vmem:[#allocation5 + $0x68] sm:$0xff]  ;;  %s1705_s23 = scalar_lea.vmem [#allocation8], %s1142_s18  ;;  %s1033_s29 = scalar_lea.hbm %s1773_s3, %s1150_s26 }
  0x33   : > { %615 = vmatpush.msra.mxu2 %v400_v1  ;;  %v384_v3 = vld [vmem:[#allocation5 + $0xf8] sm:$0xff]  ;;  %v383_v7 = vld [vmem:[#allocation5 + $0xf0] sm:$0xff]  ;;  %v398_v8 = vld [vmem:[#allocation5 + $0x168] sm:$0xff]  ;;  %s1034_s4 = sshll.u32 %s1705_s23, 4  ;;  %s1036_s5 = sshll.u32 %s1033_s29, 4  ;;  %s1035_s4 = int_to_ptr.vmem [resolvable:$true] %s1034_s4  ;;  %s1037_s5 = int_to_ptr.hbm [resolvable:$true] %s1036_s5 }
  0x34   : > { %v416_v5 = vld [vmem:[#allocation5 + $0x1f8] sm:$0xff]  ;;  %550 = vmatpush.msra.mxu1 %v384_v3  ;;  %486 = vmatpush.msra.mxu0 %v367_v2  ;;  %v415_v9 = vld [vmem:[#allocation5 + $0x1f0] sm:$0xff]  ;;  %v382_v10 = vld [vmem:[#allocation5 + $0xe8] sm:$0xff]  ;;  %s1022_s16 = scalar_lea.sflag [#allocation4], %s1510_s22  ;;  %s1329_s7 = sshra.s32 %s1037_s5, 4  ;;  %s1330_s7 = int_to_ptr.hbm [resolvable:$true] %s1329_s7 }
  0x35   : > { %680 = vmatpush.msra.mxu3 %v416_v5  ;;  %616 = vmatpush.msra.mxu2 %v399_v4  ;;  %v365_v11 = vld [vmem:[#allocation5 + $0x60] sm:$0xff]  ;;  %v414_v13 = vld [vmem:[#allocation5 + $0x1e8] sm:$0xff]  ;;  %v364_v16 = vld [vmem:[#allocation5 + $0x58] sm:$0xff]  ;;  %s1331_s8 = scalar_lea.hbm %s1330_s7, 128  ;;  %s1335_s11 = scalar_lea.hbm %s1773_s3, 512 }
  0x36   : > { %551 = vmatpush.msra.mxu1 %v383_v7  ;;  %v397_v12 = vld [vmem:[#allocation5 + $0x160] sm:$0xff]  ;;  %487 = vmatpush.msra.mxu0 %v366_v6  ;;  %v396_v17 = vld [vmem:[#allocation5 + $0x158] sm:$0xff]  ;;  %v363_v20 = vld [vmem:[#allocation5 + $0x50] sm:$0xff]  ;;  %p1332_p1 = scmp.ne.s32.totalorder %s1330_s7, %s1331_s8  ;;  %p1336_p2 = scmp.lt.s32.totalorder %s1330_s7, %s1773_s3 }
  0x37   : > { %681 = vmatpush.msra.mxu3 %v415_v9  ;;  %617 = vmatpush.msra.mxu2 %v398_v8  ;;  %v381_v14 = vld [vmem:[#allocation5 + $0xe0] sm:$0xff]  ;;  %v380_v18 = vld [vmem:[#allocation5 + $0xd8] sm:$0xff]  ;;  %v395_v21 = vld [vmem:[#allocation5 + $0x150] sm:$0xff]  ;;  %p1337_p7 = scmp.lt.s32.totalorder %s1335_s11, %s1331_s8 }
  0x38   : > { %v413_v15 = vld [vmem:[#allocation5 + $0x1e0] sm:$0xff]  ;;  %552 = vmatpush.msra.mxu1 %v382_v10  ;;  %488 = vmatpush.msra.mxu0 %v365_v11  ;;  %v412_v19 = vld [vmem:[#allocation5 + $0x1d8] sm:$0xff]  ;;  %v379_v22 = vld [vmem:[#allocation5 + $0xd0] sm:$0xff]  ;;  %p1333_p4 = pnand %p1332_p1, %p1480_p0 }
  0x39   : > { %682 = vmatpush.msra.mxu3 %v414_v13  ;;  %618 = vmatpush.msra.mxu2 %v397_v12  ;;  %v411_v23 = vld [vmem:[#allocation5 + $0x1d0] sm:$0xff]  ;;  %v362_v24 = vld [vmem:[#allocation5 + $0x48] sm:$0xff]  ;;  %v361_v28 = vld [vmem:[#allocation5 + $0x40] sm:$0xff]  ;;  %p1338_p9 = por %p1337_p7, %p1336_p2 }
  0x3a   : > { %553 = vmatpush.msra.mxu1 %v381_v14  ;;  %489 = vmatpush.msra.mxu0 %v364_v16  ;;  %v394_v25 = vld [vmem:[#allocation5 + $0x148] sm:$0xff]  ;;  %v393_v29 = vld [vmem:[#allocation5 + $0x140] sm:$0xff]  ;;  %v360_v32 = vld [vmem:[#allocation5 + $0x38] sm:$0xff]  ;;  %p1334_p8 = pneg %p1333_p4 }
  0x3b   : > { %683 = vmatpush.msra.mxu3 %v413_v15  ;;  %619 = vmatpush.msra.mxu2 %v396_v17  ;;  %v378_v26 = vld [vmem:[#allocation5 + $0xc8] sm:$0xff]  ;;  %v377_v30 = vld [vmem:[#allocation5 + $0xc0] sm:$0xff]  ;;  %v392_v33 = vld [vmem:[#allocation5 + $0x138] sm:$0xff] }
  0x3c   : > { %554 = vmatpush.msra.mxu1 %v380_v18  ;;  %490 = vmatpush.msra.mxu0 %v363_v20  ;;  %v410_v27 = vld [vmem:[#allocation5 + $0x1c8] sm:$0xff]  ;;  %v409_v31 = vld [vmem:[#allocation5 + $0x1c0] sm:$0xff]  ;;  %v376_v34 = vld [vmem:[#allocation5 + $0xb8] sm:$0xff]  ;;  %p1339_p10 = pnand %p1338_p9, %p1334_p8 }
  0x3d   : > { %684 = vmatpush.msra.mxu3 %v412_v19  ;;  %620 = vmatpush.msra.mxu2 %v395_v21  ;;  %v408_v35 = vld [vmem:[#allocation5 + $0x1b8] sm:$0xff]  ;;  %v359_v36 = vld [vmem:[#allocation5 + $0x30] sm:$0xff]  ;;  %v358_v40 = vld [vmem:[#allocation5 + $0x28] sm:$0xff] }
  0x3e   : > { %555 = vmatpush.msra.mxu1 %v379_v22  ;;  %491 = vmatpush.msra.mxu0 %v362_v24  ;;  %v391_v37 = vld [vmem:[#allocation5 + $0x130] sm:$0xff]  ;;  %v390_v41 = vld [vmem:[#allocation5 + $0x128] sm:$0xff]  ;;  %v357_v44 = vld [vmem:[#allocation5 + $0x20] sm:$0xff] }
  0x3f   : > { %685 = vmatpush.msra.mxu3 %v411_v23  ;;  %621 = vmatpush.msra.mxu2 %v394_v25  ;;  %v375_v38 = vld [vmem:[#allocation5 + $0xb0] sm:$0xff]  ;;  %v374_v42 = vld [vmem:[#allocation5 + $0xa8] sm:$0xff]  ;;  %v389_v45 = vld [vmem:[#allocation5 + $0x120] sm:$0xff] }
  0x40   : > { %556 = vmatpush.msra.mxu1 %v378_v26  ;;  %492 = vmatpush.msra.mxu0 %v361_v28  ;;  %v407_v39 = vld [vmem:[#allocation5 + $0x1b0] sm:$0xff]  ;;  %v406_v43 = vld [vmem:[#allocation5 + $0x1a8] sm:$0xff]  ;;  %v373_v46 = vld [vmem:[#allocation5 + $0xa0] sm:$0xff] }
  0x41   : > { %686 = vmatpush.msra.mxu3 %v410_v27  ;;  %622 = vmatpush.msra.mxu2 %v393_v29  ;;  %v405_v47 = vld [vmem:[#allocation5 + $0x1a0] sm:$0xff]  ;;  %v356_v48 = vld [vmem:[#allocation5 + $0x18] sm:$0xff]  ;;  %v355_v52 = vld [vmem:[#allocation5 + $0x10] sm:$0xff] }
  0x42   : > { %557 = vmatpush.msra.mxu1 %v377_v30  ;;  %493 = vmatpush.msra.mxu0 %v360_v32  ;;  %v388_v49 = vld [vmem:[#allocation5 + $0x118] sm:$0xff]  ;;  %v387_v53 = vld [vmem:[#allocation5 + $0x110] sm:$0xff]  ;;  %v354_v56 = vld [vmem:[#allocation5 + $0x8] sm:$0xff] }
  0x43   : > { %687 = vmatpush.msra.mxu3 %v409_v31  ;;  %623 = vmatpush.msra.mxu2 %v392_v33  ;;  %v372_v50 = vld [vmem:[#allocation5 + $0x98] sm:$0xff]  ;;  %v371_v54 = vld [vmem:[#allocation5 + $0x90] sm:$0xff]  ;;  %v386_v57 = vld [vmem:[#allocation5 + $0x108] sm:$0xff] }
  0x44   : > { %558 = vmatpush.msra.mxu1 %v376_v34  ;;  %494 = vmatpush.msra.mxu0 %v359_v36  ;;  %v404_v51 = vld [vmem:[#allocation5 + $0x198] sm:$0xff]  ;;  %v403_v55 = vld [vmem:[#allocation5 + $0x190] sm:$0xff]  ;;  %v370_v58 = vld [vmem:[#allocation5 + $0x88] sm:$0xff] }
  0x45   : > { %688 = vmatpush.msra.mxu3 %v408_v35  ;;  %624 = vmatpush.msra.mxu2 %v391_v37  ;;  %v402_v59 = vld [vmem:[#allocation5 + $0x188] sm:$0xff]  ;;  %v353_v60 = vld [vmem:[#allocation5] sm:$0xff]  ;;  %v227_v63 = vld [vmem:[%s1514_s30 + $0x10] sm:$0xff] }
  0x46   : > { %559 = vmatpush.msra.mxu1 %v375_v38  ;;  %495 = vmatpush.msra.mxu0 %v358_v40  ;;  %v385_v61 = vld [vmem:[#allocation5 + $0x100] sm:$0xff]  ;;  %v464_v0 = vld [vmem:[#allocation5 + $0x378] sm:$0xff]  ;;  %v226_v3 = vld [vmem:[%s1514_s30 + $0x8] sm:$0xff] }
  0x47   : > { %689 = vmatpush.msra.mxu3 %v407_v39  ;;  %625 = vmatpush.msra.mxu2 %v390_v41  ;;  %v225_v62 = vld [vmem:[%s1514_s30] sm:$0xff]  ;;  %v228_v4 = vld [vmem:[%s1514_s30 + $0x18] sm:$0xff]  ;;  %v463_v8 = vld [vmem:[#allocation5 + $0x370] sm:$0xff] }
  0x48   : > { %560 = vmatpush.msra.mxu1 %v374_v42  ;;  %496 = vmatpush.msra.mxu0 %v357_v44  ;;  %v369_v1 = vld [vmem:[#allocation5 + $0x80] sm:$0xff]  ;;  %v432_v5 = vld [vmem:[#allocation5 + $0x278] sm:$0xff]  ;;  %v431_v9 = vld [vmem:[#allocation5 + $0x270] sm:$0xff] }
  0x49   : > { %690 = vmatpush.msra.mxu3 %v406_v43  ;;  %626 = vmatpush.msra.mxu2 %v389_v45  ;;  %v401_v2 = vld [vmem:[#allocation5 + $0x180] sm:$0xff]  ;;  %v480_v6 = vld [vmem:[#allocation5 + $0x3f8] sm:$0xff]  ;;  %v479_v10 = vld [vmem:[#allocation5 + $0x3f0] sm:$0xff] }
  0x4a   : > { %561 = vmatpush.msra.mxu1 %v373_v46  ;;  %497 = vmatpush.msra.mxu0 %v356_v48  ;;  %v448_v7 = vld [vmem:[#allocation5 + $0x2f8] sm:$0xff]  ;;  %v447_v11 = vld [vmem:[#allocation5 + $0x2f0] sm:$0xff]  ;;  %v462_v12 = vld [vmem:[#allocation5 + $0x368] sm:$0xff] }
  0x4b   : > { %691 = vmatpush.msra.mxu3 %v405_v47  ;;  %627 = vmatpush.msra.mxu2 %v388_v49  ;;  %v430_v13 = vld [vmem:[#allocation5 + $0x268] sm:$0xff]  ;;  %v233_v14 = vld [vmem:[%s1514_s30 + $0x40] sm:$0xff]  ;;  %v235_v15 = vld [vmem:[%s1514_s30 + $0x50] sm:$0xff] }
  0x4c   : > { %562 = vmatpush.msra.mxu1 %v372_v50  ;;  %498 = vmatpush.msra.mxu0 %v355_v52  ;;  %v478_v16 = vld [vmem:[#allocation5 + $0x3e8] sm:$0xff]  ;;  %v461_v19 = vld [vmem:[#allocation5 + $0x360] sm:$0xff]  ;;  %v236_v20 = vld [vmem:[%s1514_s30 + $0x58] sm:$0xff] }
  0x4d   : > { %692 = vmatpush.msra.mxu3 %v404_v51  ;;  %628 = vmatpush.msra.mxu2 %v387_v53  ;;  %v446_v17 = vld [vmem:[#allocation5 + $0x2e8] sm:$0xff]  ;;  %v429_v21 = vld [vmem:[#allocation5 + $0x260] sm:$0xff]  ;;  %v460_v24 = vld [vmem:[#allocation5 + $0x358] sm:$0xff] }
  0x4e   : > { %563 = vmatpush.msra.mxu1 %v371_v54  ;;  %499 = vmatpush.msra.mxu0 %v354_v56  ;;  %v234_v18 = vld [vmem:[%s1514_s30 + $0x48] sm:$0xff]  ;;  %v477_v22 = vld [vmem:[#allocation5 + $0x3e0] sm:$0xff]  ;;  %v428_v25 = vld [vmem:[#allocation5 + $0x258] sm:$0xff] }
  0x4f   : > { %693 = vmatpush.msra.mxu3 %v403_v55  ;;  %629 = vmatpush.msra.mxu2 %v386_v57  ;;  %v445_v23 = vld [vmem:[#allocation5 + $0x2e0] sm:$0xff]  ;;  %v476_v26 = vld [vmem:[#allocation5 + $0x3d8] sm:$0xff]  ;;  %v459_v28 = vld [vmem:[#allocation5 + $0x350] sm:$0xff] }
  0x50   : > { %564 = vmatpush.msra.mxu1 %v370_v58  ;;  %500 = vmatpush.msra.mxu0 %v353_v60  ;;  %v444_v27 = vld [vmem:[#allocation5 + $0x2d8] sm:$0xff]  ;;  %v427_v29 = vld [vmem:[#allocation5 + $0x250] sm:$0xff]  ;;  %v241_v30 = vld [vmem:[%s1514_s30 + $0x80] sm:$0xff] }
  0x51   : > { %694 = vmatpush.msra.mxu3 %v402_v59  ;;  %630 = vmatpush.msra.mxu2 %v385_v61  ;;  %v243_v31 = vld [vmem:[%s1514_s30 + $0x90] sm:$0xff]  ;;  %v242_v34 = vld [vmem:[%s1514_s30 + $0x88] sm:$0xff]  ;;  %v244_v35 = vld [vmem:[%s1514_s30 + $0x98] sm:$0xff] }
  0x52   : > { %501 = vmatmul.f32.vlgmr.msra.gmra.mxu0 %v225_v62  ;;  %631 = vmatmul.f32.vlgmr.msra.gmra.mxu2 %v227_v63  ;;  %v475_v32 = vld [vmem:[#allocation5 + $0x3d0] sm:$0xff]  ;;  %v458_v36 = vld [vmem:[#allocation5 + $0x348] sm:$0xff]  ;;  %v249_v40 = vld [vmem:[%s1514_s30 + $0xc0] sm:$0xff] }
  0x53   : > { %875 = vmatpush.msrb.mxu2 %v464_v0  ;;  %565 = vmatpush.msra.mxu1 %v369_v1  ;;  %v443_v33 = vld [vmem:[#allocation5 + $0x2d0] sm:$0xff]  ;;  %v426_v37 = vld [vmem:[#allocation5 + $0x248] sm:$0xff]  ;;  %v252_v43 = vld [vmem:[%s1514_s30 + $0xd8] sm:$0xff] }
  0x54   : > { %695 = vmatpush.msra.mxu3 %v401_v2  ;;  %566 = vmatmul.f32.vlgmr.msra.gmra.mxu1 %v226_v3  ;;  %v474_v38 = vld [vmem:[#allocation5 + $0x3c8] sm:$0xff]  ;;  %v251_v41 = vld [vmem:[%s1514_s30 + $0xd0] sm:$0xff]  ;;  %v457_v44 = vld [vmem:[#allocation5 + $0x340] sm:$0xff] }
  0x55   : > { %696 = vmatmul.f32.vlgmr.msra.gmra.mxu3 %v228_v4  ;;  %745 = vmatpush.msrb.mxu0 %v432_v5  ;;  %v442_v39 = vld [vmem:[#allocation5 + $0x2c8] sm:$0xff]  ;;  %v425_v45 = vld [vmem:[#allocation5 + $0x240] sm:$0xff]  ;;  %v259_v49 = vld [vmem:[%s1514_s30 + $0x110] sm:$0xff] }
  0x56   : > { %940 = vmatpush.msrb.mxu3 %v480_v6  ;;  %810 = vmatpush.msrb.mxu1 %v448_v7  ;;  %v250_v42 = vld [vmem:[%s1514_s30 + $0xc8] sm:$0xff]  ;;  %v473_v46 = vld [vmem:[#allocation5 + $0x3c0] sm:$0xff]  ;;  %v260_v51 = vld [vmem:[%s1514_s30 + $0x118] sm:$0xff] }
  0x57   : > { %876 = vmatpush.msrb.mxu2 %v463_v8  ;;  %746 = vmatpush.msrb.mxu0 %v431_v9  ;;  %v441_v47 = vld [vmem:[#allocation5 + $0x2c0] sm:$0xff]  ;;  %v258_v50 = vld [vmem:[%s1514_s30 + $0x108] sm:$0xff]  ;;  %v456_v52 = vld [vmem:[#allocation5 + $0x338] sm:$0xff] }
  0x58   : > { %941 = vmatpush.msrb.mxu3 %v479_v10  ;;  %811 = vmatpush.msrb.mxu1 %v447_v11  ;;  %v257_v48 = vld [vmem:[%s1514_s30 + $0x100] sm:$0xff]  ;;  %v424_v53 = vld [vmem:[#allocation5 + $0x238] sm:$0xff]  ;;  %v267_v57 = vld [vmem:[%s1514_s30 + $0x150] sm:$0xff] }
  0x59   : > { %877 = vmatpush.msrb.mxu2 %v462_v12  ;;  %747 = vmatpush.msrb.mxu0 %v430_v13  ;;  %v472_v54 = vld [vmem:[#allocation5 + $0x3b8] sm:$0xff]  ;;  %v265_v56 = vld [vmem:[%s1514_s30 + $0x140] sm:$0xff]  ;;  %v266_v58 = vld [vmem:[%s1514_s30 + $0x148] sm:$0xff] }
  0x5a   : > { %504 = vmatmul.f32.gmra.mxu0 %v233_v14  ;;  %634 = vmatmul.f32.gmra.mxu2 %v235_v15  ;;  %v440_v55 = vld [vmem:[#allocation5 + $0x2b8] sm:$0xff]  ;;  %v455_v60 = vld [vmem:[#allocation5 + $0x330] sm:$0xff]  ;;  %v273_v0 = vld [vmem:[%s1514_s30 + $0x180] sm:$0xff] }
  0x5b   : > { %942 = vmatpush.msrb.mxu3 %v478_v16  ;;  %812 = vmatpush.msrb.mxu1 %v446_v17  ;;  %v268_v59 = vld [vmem:[%s1514_s30 + $0x158] sm:$0xff]  ;;  %v423_v61 = vld [vmem:[#allocation5 + $0x230] sm:$0xff]  ;;  %v274_v2 = vld [vmem:[%s1514_s30 + $0x188] sm:$0xff] }
  0x5c   : > { %569 = vmatmul.f32.gmra.mxu1 %v234_v18  ;;  %878 = vmatpush.msrb.mxu2 %v461_v19  ;;  %v471_v62 = vld [vmem:[#allocation5 + $0x3b0] sm:$0xff]  ;;  %v276_v3 = vld [vmem:[%s1514_s30 + $0x198] sm:$0xff]  ;;  %v454_v4 = vld [vmem:[#allocation5 + $0x328] sm:$0xff] }
  0x5d   : > { %699 = vmatmul.f32.gmra.mxu3 %v236_v20  ;;  %748 = vmatpush.msrb.mxu0 %v429_v21  ;;  %v439_v63 = vld [vmem:[#allocation5 + $0x2b0] sm:$0xff]  ;;  %v422_v5 = vld [vmem:[#allocation5 + $0x228] sm:$0xff]  ;;  %v281_v8 = vld [vmem:[%s1514_s30 + $0x1c0] sm:$0xff] }
  0x5e   : > { %943 = vmatpush.msrb.mxu3 %v477_v22  ;;  %813 = vmatpush.msrb.mxu1 %v445_v23  ;;  %v275_v1 = vld [vmem:[%s1514_s30 + $0x190] sm:$0xff]  ;;  %v470_v6 = vld [vmem:[#allocation5 + $0x3a8] sm:$0xff]  ;;  %v284_v11 = vld [vmem:[%s1514_s30 + $0x1d8] sm:$0xff] }
  0x5f   : > { %879 = vmatpush.msrb.mxu2 %v460_v24  ;;  %749 = vmatpush.msrb.mxu0 %v428_v25  ;;  %v438_v7 = vld [vmem:[#allocation5 + $0x2a8] sm:$0xff]  ;;  %v283_v9 = vld [vmem:[%s1514_s30 + $0x1d0] sm:$0xff]  ;;  %v453_v12 = vld [vmem:[#allocation5 + $0x320] sm:$0xff] }
  0x60   : > { %944 = vmatpush.msrb.mxu3 %v476_v26  ;;  %814 = vmatpush.msrb.mxu1 %v444_v27  ;;  %v282_v10 = vld [vmem:[%s1514_s30 + $0x1c8] sm:$0xff]  ;;  %v421_v13 = vld [vmem:[#allocation5 + $0x220] sm:$0xff]  ;;  %v291_v17 = vld [vmem:[%s1514_s30 + $0x210] sm:$0xff] }
  0x61   : > { %880 = vmatpush.msrb.mxu2 %v459_v28  ;;  %750 = vmatpush.msrb.mxu0 %v427_v29  ;;  %v469_v14 = vld [vmem:[#allocation5 + $0x3a0] sm:$0xff]  ;;  %v290_v18 = vld [vmem:[%s1514_s30 + $0x208] sm:$0xff]  ;;  %v292_v19 = vld [vmem:[%s1514_s30 + $0x218] sm:$0xff] }
  0x62   : > { %507 = vmatmul.f32.gmra.mxu0 %v241_v30  ;;  %637 = vmatmul.f32.gmra.mxu2 %v243_v31  ;;  %v437_v15 = vld [vmem:[#allocation5 + $0x2a0] sm:$0xff]  ;;  %v452_v20 = vld [vmem:[#allocation5 + $0x318] sm:$0xff]  ;;  %v299_v25 = vld [vmem:[%s1514_s30 + $0x250] sm:$0xff] }
  0x63   : > { %945 = vmatpush.msrb.mxu3 %v475_v32  ;;  %815 = vmatpush.msrb.mxu1 %v443_v33  ;;  %v289_v16 = vld [vmem:[%s1514_s30 + $0x200] sm:$0xff]  ;;  %v420_v21 = vld [vmem:[#allocation5 + $0x218] sm:$0xff]  ;;  %v298_v26 = vld [vmem:[%s1514_s30 + $0x248] sm:$0xff] }
  0x64   : > { %572 = vmatmul.f32.gmra.mxu1 %v242_v34  ;;  %881 = vmatpush.msrb.mxu2 %v458_v36  ;;  %v468_v22 = vld [vmem:[#allocation5 + $0x398] sm:$0xff]  ;;  %v297_v24 = vld [vmem:[%s1514_s30 + $0x240] sm:$0xff]  ;;  %v451_v28 = vld [vmem:[#allocation5 + $0x310] sm:$0xff] }
  0x65   : > { %702 = vmatmul.f32.gmra.mxu3 %v244_v35  ;;  %751 = vmatpush.msrb.mxu0 %v426_v37  ;;  %v436_v23 = vld [vmem:[#allocation5 + $0x298] sm:$0xff]  ;;  %v419_v29 = vld [vmem:[#allocation5 + $0x210] sm:$0xff]  ;;  %v305_v32 = vld [vmem:[%s1514_s30 + $0x280] sm:$0xff] }
  0x66   : > { %946 = vmatpush.msrb.mxu3 %v474_v38  ;;  %816 = vmatpush.msrb.mxu1 %v442_v39  ;;  %v300_v27 = vld [vmem:[%s1514_s30 + $0x258] sm:$0xff]  ;;  %v467_v30 = vld [vmem:[#allocation5 + $0x390] sm:$0xff]  ;;  %v306_v34 = vld [vmem:[%s1514_s30 + $0x288] sm:$0xff] }
  0x67   : > { %882 = vmatpush.msrb.mxu2 %v457_v44  ;;  %752 = vmatpush.msrb.mxu0 %v425_v45  ;;  %v435_v31 = vld [vmem:[#allocation5 + $0x290] sm:$0xff]  ;;  %v308_v35 = vld [vmem:[%s1514_s30 + $0x298] sm:$0xff]  ;;  %v450_v36 = vld [vmem:[#allocation5 + $0x308] sm:$0xff] }
  0x68   : > { %947 = vmatpush.msrb.mxu3 %v473_v46  ;;  %817 = vmatpush.msrb.mxu1 %v441_v47  ;;  %v307_v33 = vld [vmem:[%s1514_s30 + $0x290] sm:$0xff]  ;;  %v418_v37 = vld [vmem:[#allocation5 + $0x208] sm:$0xff]  ;;  %v449_v44 = vld [vmem:[#allocation5 + $0x300] sm:$0xff] }
  0x69   : > { %883 = vmatpush.msrb.mxu2 %v456_v52  ;;  %753 = vmatpush.msrb.mxu0 %v424_v53  ;;  %v466_v38 = vld [vmem:[#allocation5 + $0x388] sm:$0xff]  ;;  %v417_v45 = vld [vmem:[#allocation5 + $0x200] sm:$0xff]  ;;  %v331_v53 = vld [vmem:[%s1514_s30 + $0x350] sm:$0xff] }
  0x6a   : > { %510 = vmatmul.f32.gmra.mxu0 %v249_v40  ;;  %640 = vmatmul.f32.gmra.mxu2 %v251_v41  ;;  %v434_v39 = vld [vmem:[#allocation5 + $0x288] sm:$0xff]  ;;  %v313_v40 = vld [vmem:[%s1514_s30 + $0x2c0] sm:$0xff]  ;;  %v315_v41 = vld [vmem:[%s1514_s30 + $0x2d0] sm:$0xff] }
  0x6b   : > { %948 = vmatpush.msrb.mxu3 %v472_v54  ;;  %818 = vmatpush.msrb.mxu1 %v440_v55  ;;  %v465_v46 = vld [vmem:[#allocation5 + $0x380] sm:$0xff]  ;;  %v330_v54 = vld [vmem:[%s1514_s30 + $0x348] sm:$0xff]  ;;  %v332_v55 = vld [vmem:[%s1514_s30 + $0x358] sm:$0xff] }
  0x6c   : > { %575 = vmatmul.f32.gmra.mxu1 %v250_v42  ;;  %884 = vmatpush.msrb.mxu2 %v455_v60  ;;  %v314_v42 = vld [vmem:[%s1514_s30 + $0x2c8] sm:$0xff]  ;;  %v433_v47 = vld [vmem:[#allocation5 + $0x280] sm:$0xff] }
  0x6d   : > { %705 = vmatmul.f32.gmra.mxu3 %v252_v43  ;;  %754 = vmatpush.msrb.mxu0 %v423_v61  ;;  %v316_v43 = vld [vmem:[%s1514_s30 + $0x2d8] sm:$0xff]  ;;  %v329_v52 = vld [vmem:[%s1514_s30 + $0x340] sm:$0xff]  ;;  %v347_v61 = vld [vmem:[%s1514_s30 + $0x3d0] sm:$0xff] }
  0x6e   : > { %949 = vmatpush.msrb.mxu3 %v471_v62  ;;  %819 = vmatpush.msrb.mxu1 %v439_v63  ;;  %v345_v60 = vld [vmem:[%s1514_s30 + $0x3c0] sm:$0xff]  ;;  %v346_v62 = vld [vmem:[%s1514_s30 + $0x3c8] sm:$0xff]  ;;  %v348_v63 = vld [vmem:[%s1514_s30 + $0x3d8] sm:$0xff] }
  0x6f   : > { %885 = vmatpush.msrb.mxu2 %v454_v4  ;;  %755 = vmatpush.msrb.mxu0 %v422_v5 }
  0x70   : > { %950 = vmatpush.msrb.mxu3 %v470_v6  ;;  %820 = vmatpush.msrb.mxu1 %v438_v7  ;;  %v230_v6 = vld [vmem:[%s1514_s30 + $0x28] sm:$0xff] }
  0x71   : > { %886 = vmatpush.msrb.mxu2 %v453_v12  ;;  %756 = vmatpush.msrb.mxu0 %v421_v13  ;;  %v237_v12 = vld [vmem:[%s1514_s30 + $0x60] sm:$0xff]  ;;  %v239_v13 = vld [vmem:[%s1514_s30 + $0x70] sm:$0xff] }
  0x72   : > { %513 = vmatmul.f32.gmra.mxu0 %v257_v48  ;;  %643 = vmatmul.f32.gmra.mxu2 %v259_v49  ;;  %v321_v48 = vld [vmem:[%s1514_s30 + $0x300] sm:$0xff]  ;;  %v323_v49 = vld [vmem:[%s1514_s30 + $0x310] sm:$0xff] }
  0x73   : > { %951 = vmatpush.msrb.mxu3 %v469_v14  ;;  %821 = vmatpush.msrb.mxu1 %v437_v15 }
  0x74   : > { %578 = vmatmul.f32.gmra.mxu1 %v258_v50  ;;  %887 = vmatpush.msrb.mxu2 %v452_v20  ;;  %v322_v50 = vld [vmem:[%s1514_s30 + $0x308] sm:$0xff]  ;;  %v240_v20 = vld [vmem:[%s1514_s30 + $0x78] sm:$0xff] }
  0x75   : > { %708 = vmatmul.f32.gmra.mxu3 %v260_v51  ;;  %757 = vmatpush.msrb.mxu0 %v420_v21  ;;  %v324_v51 = vld [vmem:[%s1514_s30 + $0x318] sm:$0xff] }
  0x76   : > { %952 = vmatpush.msrb.mxu3 %v468_v22  ;;  %822 = vmatpush.msrb.mxu1 %v436_v23 }
  0x77   : > { %888 = vmatpush.msrb.mxu2 %v451_v28  ;;  %758 = vmatpush.msrb.mxu0 %v419_v29 }
  0x78   : > { %953 = vmatpush.msrb.mxu3 %v467_v30  ;;  %823 = vmatpush.msrb.mxu1 %v435_v31  ;;  %v246_v30 = vld [vmem:[%s1514_s30 + $0xa8] sm:$0xff] }
  0x79   : > { %889 = vmatpush.msrb.mxu2 %v450_v36  ;;  %759 = vmatpush.msrb.mxu0 %v418_v37  ;;  %v253_v36 = vld [vmem:[%s1514_s30 + $0xe0] sm:$0xff]  ;;  %v255_v37 = vld [vmem:[%s1514_s30 + $0xf0] sm:$0xff] }
  0x7a   : > { %516 = vmatmul.f32.gmra.mxu0 %v265_v56  ;;  %646 = vmatmul.f32.gmra.mxu2 %v267_v57  ;;  %v337_v56 = vld [vmem:[%s1514_s30 + $0x380] sm:$0xff]  ;;  %v339_v57 = vld [vmem:[%s1514_s30 + $0x390] sm:$0xff] }
  0x7b   : > { %954 = vmatpush.msrb.mxu3 %v466_v38  ;;  %824 = vmatpush.msrb.mxu1 %v434_v39 }
  0x7c   : > { %581 = vmatmul.f32.gmra.mxu1 %v266_v58  ;;  %890 = vmatpush.msrb.mxu2 %v449_v44  ;;  %v338_v58 = vld [vmem:[%s1514_s30 + $0x388] sm:$0xff]  ;;  %v256_v44 = vld [vmem:[%s1514_s30 + $0xf8] sm:$0xff] }
  0x7d   : > { %711 = vmatmul.f32.gmra.mxu3 %v268_v59  ;;  %760 = vmatpush.msrb.mxu0 %v417_v45  ;;  %v340_v59 = vld [vmem:[%s1514_s30 + $0x398] sm:$0xff] }
  0x7e   : > { %955 = vmatpush.msrb.mxu3 %v465_v46  ;;  %825 = vmatpush.msrb.mxu1 %v433_v47 }
  0x82   : > { %519 = vmatmul.f32.gmra.mxu0 %v273_v0  ;;  %649 = vmatmul.f32.gmra.mxu2 %v275_v1  ;;  %v1588_v0 = vld [vmem:[#allocation7] ss:$0 sm:$0xff] }
  0x84   : > { %584 = vmatmul.f32.gmra.mxu1 %v274_v2  ;;  %v229_v2 = vld [vmem:[%s1514_s30 + $0x20] sm:$0xff] }
  0x85   : > { %714 = vmatmul.f32.gmra.mxu3 %v276_v3  ;;  %v231_v3 = vld [vmem:[%s1514_s30 + $0x30] sm:$0xff] }
  0x8a   : > { %522 = vmatmul.f32.gmra.mxu0 %v281_v8  ;;  %652 = vmatmul.f32.gmra.mxu2 %v283_v9  ;;  %v232_v8 = vld [vmem:[%s1514_s30 + $0x38] sm:$0xff] }
  0x8c   : > { %587 = vmatmul.f32.gmra.mxu1 %v282_v10 }
  0x8d   : > { %717 = vmatmul.f32.gmra.mxu3 %v284_v11 }
  0x92   : > { %525 = vmatmul.f32.gmra.mxu0 %v289_v16  ;;  %655 = vmatmul.f32.gmra.mxu2 %v291_v17 }
  0x94   : > { %590 = vmatmul.f32.gmra.mxu1 %v290_v18  ;;  %v238_v18 = vld [vmem:[%s1514_s30 + $0x68] sm:$0xff] }
  0x95   : > { %720 = vmatmul.f32.gmra.mxu3 %v292_v19 }
  0x9a   : > { %528 = vmatmul.f32.gmra.mxu0 %v297_v24  ;;  %658 = vmatmul.f32.gmra.mxu2 %v299_v25  ;;  %v245_v24 = vld [vmem:[%s1514_s30 + $0xa0] sm:$0xff]  ;;  %v247_v25 = vld [vmem:[%s1514_s30 + $0xb0] sm:$0xff] }
  0x9c   : > { %593 = vmatmul.f32.gmra.mxu1 %v298_v26 }
  0x9d   : > { %723 = vmatmul.f32.gmra.mxu3 %v300_v27 }
  0xa2   : > { %531 = vmatmul.f32.gmra.mxu0 %v305_v32  ;;  %661 = vmatmul.f32.gmra.mxu2 %v307_v33  ;;  %v248_v32 = vld [vmem:[%s1514_s30 + $0xb8] sm:$0xff] }
  0xa4   : > { %596 = vmatmul.f32.gmra.mxu1 %v306_v34 }
  0xa5   : > { %726 = vmatmul.f32.gmra.mxu3 %v308_v35 }
  0xaa   : > { %534 = vmatmul.f32.gmra.mxu0 %v313_v40  ;;  %664 = vmatmul.f32.gmra.mxu2 %v315_v41 }
  0xac   : > { %599 = vmatmul.f32.gmra.mxu1 %v314_v42  ;;  %v254_v42 = vld [vmem:[%s1514_s30 + $0xe8] sm:$0xff] }
  0xad   : > { %729 = vmatmul.f32.gmra.mxu3 %v316_v43 }
  0xb2   : > { %537 = vmatmul.f32.gmra.mxu0 %v321_v48  ;;  %667 = vmatmul.f32.gmra.mxu2 %v323_v49  ;;  %v261_v48 = vld [vmem:[%s1514_s30 + $0x120] sm:$0xff]  ;;  %v263_v49 = vld [vmem:[%s1514_s30 + $0x130] sm:$0xff] }
  0xb4   : > { %602 = vmatmul.f32.gmra.mxu1 %v322_v50 }
  0xb5   : > { %732 = vmatmul.f32.gmra.mxu3 %v324_v51 }
  0xba   : > { %540 = vmatmul.f32.gmra.mxu0 %v329_v52  ;;  %670 = vmatmul.f32.gmra.mxu2 %v331_v53 }
  0xbc   : > { %605 = vmatmul.f32.gmra.mxu1 %v330_v54  ;;  %v262_v54 = vld [vmem:[%s1514_s30 + $0x128] sm:$0xff] }
  0xbd   : > { %735 = vmatmul.f32.gmra.mxu3 %v332_v55 }
  0xc2   : > { %543 = vmatmul.f32.gmra.mxu0 %v337_v56  ;;  %673 = vmatmul.f32.gmra.mxu2 %v339_v57  ;;  %v264_v56 = vld [vmem:[%s1514_s30 + $0x138] sm:$0xff] }
  0xc4   : > { %608 = vmatmul.f32.gmra.mxu1 %v338_v58 }
  0xc5   : > { %738 = vmatmul.f32.gmra.mxu3 %v340_v59 }
  0xca   : > { %546 = vmatmul.f32.gmra.mxu0 %v345_v60  ;;  %676 = vmatmul.f32.gmra.mxu2 %v347_v61  ;;  %v269_v60 = vld [vmem:[%s1514_s30 + $0x160] sm:$0xff]  ;;  %v271_v61 = vld [vmem:[%s1514_s30 + $0x170] sm:$0xff] }
  0xcc   : > { %611 = vmatmul.f32.gmra.mxu1 %v346_v62 }
  0xcd   : > { %741 = vmatmul.f32.gmra.mxu3 %v348_v63 }
  0xcf   : > { %v502_v1 = vpop.f32.mrf.mxu0 }
  0xd0   : > { %v503_v4 = vadd.f32 %v1588_v0, %v502_v1 }
  0xd1   : > { %v567_v5 = vpop.f32.mrf.mxu1 }
  0xd2   : > { %v568_v7 = vadd.f32 %v567_v5, %v503_v4  ;;  %761 = vmatmul.f32.vlgmr.msrb.gmra.mxu0 %v229_v2  ;;  %891 = vmatmul.f32.vlgmr.msrb.gmra.mxu2 %v231_v3  ;;  %v270_v3 = vld [vmem:[%s1514_s30 + $0x168] sm:$0xff]  ;;  %v272_v5 = vld [vmem:[%s1514_s30 + $0x178] sm:$0xff] }
  0xd4   : > { %826 = vmatmul.f32.vlgmr.msrb.gmra.mxu1 %v230_v6 }
  0xd5   : > { %956 = vmatmul.f32.vlgmr.msrb.gmra.mxu3 %v232_v8  ;;  %v632_v9 = vpop.f32.mrf.mxu2 }
  0xd6   : > { %v633_v10 = vadd.f32 %v632_v9, %v568_v7  ;;  %v277_v9 = vld [vmem:[%s1514_s30 + $0x1a0] sm:$0xff] }
  0xd7   : > { %v505_v11 = vpop.f32.mrf.mxu0 }
  0xd8   : > { %v506_v14 = vadd.f32 %v1588_v0, %v505_v11  ;;  %v697_v15 = vpop.f32.mrf.mxu3 }
  0xd9   : > { %v1598_v16 = vadd.f32 %v697_v15, %v633_v10  ;;  %v570_v17 = vpop.f32.mrf.mxu1  ;;  %v279_v10 = vld [vmem:[%s1514_s30 + $0x1b0] sm:$0xff]  ;;  %v278_v15 = vld [vmem:[%s1514_s30 + $0x1a8] sm:$0xff] }
  0xda   : > { %v571_v19 = vadd.f32 %v570_v17, %v506_v14  ;;  %764 = vmatmul.f32.gmra.mxu0 %v237_v12  ;;  %894 = vmatmul.f32.gmra.mxu2 %v239_v13 }
  0xdc   : > { %829 = vmatmul.f32.gmra.mxu1 %v238_v18  ;;  %v280_v18 = vld [vmem:[%s1514_s30 + $0x1b8] sm:$0xff] }
  0xdd   : > { %959 = vmatmul.f32.gmra.mxu3 %v240_v20  ;;  %v635_v21 = vpop.f32.mrf.mxu2 }
  0xde   : > { %v636_v22 = vadd.f32 %v635_v21, %v571_v19 }
  0xdf   : > { %v508_v23 = vpop.f32.mrf.mxu0 }
  0xe0   : > { %v509_v26 = vadd.f32 %v1588_v0, %v508_v23  ;;  %v700_v27 = vpop.f32.mrf.mxu3  ;;  %v287_v23 = vld [vmem:[%s1514_s30 + $0x1f0] sm:$0xff] }
  0xe1   : > { %v1605_v28 = vadd.f32 %v700_v27, %v636_v22  ;;  %v573_v29 = vpop.f32.mrf.mxu1  ;;  %v285_v22 = vld [vmem:[%s1514_s30 + $0x1e0] sm:$0xff] }
  0xe2   : > { %v574_v31 = vadd.f32 %v573_v29, %v509_v26  ;;  %767 = vmatmul.f32.gmra.mxu0 %v245_v24  ;;  %897 = vmatmul.f32.gmra.mxu2 %v247_v25  ;;  %v286_v29 = vld [vmem:[%s1514_s30 + $0x1e8] sm:$0xff] }
  0xe4   : > { %832 = vmatmul.f32.gmra.mxu1 %v246_v30 }
  0xe5   : > { %962 = vmatmul.f32.gmra.mxu3 %v248_v32  ;;  %v638_v33 = vpop.f32.mrf.mxu2 }
  0xe6   : > { %v639_v34 = vadd.f32 %v638_v33, %v574_v31  ;;  %v288_v31 = vld [vmem:[%s1514_s30 + $0x1f8] sm:$0xff] }
  0xe7   : > { %v511_v35 = vpop.f32.mrf.mxu0 }
  0xe8   : > { %v512_v38 = vadd.f32 %v1588_v0, %v511_v35  ;;  %v703_v39 = vpop.f32.mrf.mxu3  ;;  %v293_v35 = vld [vmem:[%s1514_s30 + $0x220] sm:$0xff] }
  0xe9   : > { %v1612_v40 = vadd.f32 %v703_v39, %v639_v34  ;;  %v576_v41 = vpop.f32.mrf.mxu1 }
  0xea   : > { %v577_v43 = vadd.f32 %v576_v41, %v512_v38  ;;  %770 = vmatmul.f32.gmra.mxu0 %v253_v36  ;;  %900 = vmatmul.f32.gmra.mxu2 %v255_v37  ;;  %v295_v36 = vld [vmem:[%s1514_s30 + $0x230] sm:$0xff] }
  0xec   : > { %835 = vmatmul.f32.gmra.mxu1 %v254_v42  ;;  %v294_v42 = vld [vmem:[%s1514_s30 + $0x228] sm:$0xff] }
  0xed   : > { %965 = vmatmul.f32.gmra.mxu3 %v256_v44  ;;  %v641_v45 = vpop.f32.mrf.mxu2  ;;  %v296_v44 = vld [vmem:[%s1514_s30 + $0x238] sm:$0xff] }
  0xee   : > { %v642_v46 = vadd.f32 %v641_v45, %v577_v43 }
  0xef   : > { %v514_v47 = vpop.f32.mrf.mxu0 }
  0xf0   : > { %v515_v50 = vadd.f32 %v1588_v0, %v514_v47  ;;  %v706_v51 = vpop.f32.mrf.mxu3 }
  0xf1   : > { %v1619_v52 = vadd.f32 %v706_v51, %v642_v46  ;;  %v579_v53 = vpop.f32.mrf.mxu1 }
  0xf2   : > { %v580_v55 = vadd.f32 %v579_v53, %v515_v50  ;;  %773 = vmatmul.f32.gmra.mxu0 %v261_v48  ;;  %903 = vmatmul.f32.gmra.mxu2 %v263_v49  ;;  %v301_v48 = vld [vmem:[%s1514_s30 + $0x260] sm:$0xff]  ;;  %v303_v49 = vld [vmem:[%s1514_s30 + $0x270] sm:$0xff] }
  0xf4   : > { %838 = vmatmul.f32.gmra.mxu1 %v262_v54 }
  0xf5   : > { %968 = vmatmul.f32.gmra.mxu3 %v264_v56  ;;  %v644_v57 = vpop.f32.mrf.mxu2 }
  0xf6   : > { %v645_v58 = vadd.f32 %v644_v57, %v580_v55  ;;  %v302_v55 = vld [vmem:[%s1514_s30 + $0x268] sm:$0xff]  ;;  %v304_v57 = vld [vmem:[%s1514_s30 + $0x278] sm:$0xff] }
  0xf7   : > { %v517_v59 = vpop.f32.mrf.mxu0 }
  0xf8   : > { %v518_v62 = vadd.f32 %v1588_v0, %v517_v59  ;;  %v709_v63 = vpop.f32.mrf.mxu3 }
  0xf9   : > { %v1626_v1 = vadd.f32 %v709_v63, %v645_v58  ;;  %v582_v2 = vpop.f32.mrf.mxu1 }
  0xfa   : > { %v583_v4 = vadd.f32 %v582_v2, %v518_v62  ;;  %776 = vmatmul.f32.gmra.mxu0 %v269_v60  ;;  %906 = vmatmul.f32.gmra.mxu2 %v271_v61  ;;  %v309_v61 = vld [vmem:[%s1514_s30 + $0x2a0] sm:$0xff]  ;;  %v311_v62 = vld [vmem:[%s1514_s30 + $0x2b0] sm:$0xff] }
  0xfc   : > { %841 = vmatmul.f32.gmra.mxu1 %v270_v3 }
  0xfd   : > { %971 = vmatmul.f32.gmra.mxu3 %v272_v5  ;;  %v647_v6 = vpop.f32.mrf.mxu2  ;;  %v310_v5 = vld [vmem:[%s1514_s30 + $0x2a8] sm:$0xff] }
  0xfe   : > { %v648_v7 = vadd.f32 %v647_v6, %v583_v4 }
  0xff   : > { %v520_v8 = vpop.f32.mrf.mxu0 }
 0x100   : > { %v521_v11 = vadd.f32 %v1588_v0, %v520_v8  ;;  %v712_v12 = vpop.f32.mrf.mxu3 }
 0x101   : > { %v1633_v13 = vadd.f32 %v712_v12, %v648_v7  ;;  %v585_v14 = vpop.f32.mrf.mxu1  ;;  %v312_v7 = vld [vmem:[%s1514_s30 + $0x2b8] sm:$0xff]  ;;  %v319_v12 = vld [vmem:[%s1514_s30 + $0x2f0] sm:$0xff] }
 0x102   : > { %v586_v17 = vadd.f32 %v585_v14, %v521_v11  ;;  %779 = vmatmul.f32.gmra.mxu0 %v277_v9  ;;  %909 = vmatmul.f32.gmra.mxu2 %v279_v10  ;;  %v317_v11 = vld [vmem:[%s1514_s30 + $0x2e0] sm:$0xff] }
 0x104   : > { %844 = vmatmul.f32.gmra.mxu1 %v278_v15 }
 0x105   : > { %974 = vmatmul.f32.gmra.mxu3 %v280_v18  ;;  %v650_v19 = vpop.f32.mrf.mxu2 }
 0x106   : > { %v651_v20 = vadd.f32 %v650_v19, %v586_v17  ;;  %v318_v19 = vld [vmem:[%s1514_s30 + $0x2e8] sm:$0xff] }
 0x107   : > { %v523_v21 = vpop.f32.mrf.mxu0 }
 0x108   : > { %v524_v24 = vadd.f32 %v1588_v0, %v523_v21  ;;  %v715_v25 = vpop.f32.mrf.mxu3  ;;  %v320_v21 = vld [vmem:[%s1514_s30 + $0x2f8] sm:$0xff] }
 0x109   : > { %v1640_v26 = vadd.f32 %v715_v25, %v651_v20  ;;  %v588_v27 = vpop.f32.mrf.mxu1  ;;  %v325_v25 = vld [vmem:[%s1514_s30 + $0x320] sm:$0xff] }
 0x10a   : > { %v589_v30 = vadd.f32 %v588_v27, %v524_v24  ;;  %782 = vmatmul.f32.gmra.mxu0 %v285_v22  ;;  %912 = vmatmul.f32.gmra.mxu2 %v287_v23  ;;  %v327_v27 = vld [vmem:[%s1514_s30 + $0x330] sm:$0xff] }
 0x10c   : > { %847 = vmatmul.f32.gmra.mxu1 %v286_v29 }
 0x10d   : > { %977 = vmatmul.f32.gmra.mxu3 %v288_v31  ;;  %v653_v32 = vpop.f32.mrf.mxu2 }
 0x10e   : > { %v654_v33 = vadd.f32 %v653_v32, %v589_v30 }
 0x10f   : > { %v526_v34 = vpop.f32.mrf.mxu0 }
 0x110   : > { %v527_v37 = vadd.f32 %v1588_v0, %v526_v34  ;;  %v718_v38 = vpop.f32.mrf.mxu3 }
 0x111   : > { %v1647_v39 = vadd.f32 %v718_v38, %v654_v33  ;;  %v591_v41 = vpop.f32.mrf.mxu1  ;;  %v326_v33 = vld [vmem:[%s1514_s30 + $0x328] sm:$0xff] }
 0x112   : > { %v592_v43 = vadd.f32 %v591_v41, %v527_v37  ;;  %785 = vmatmul.f32.gmra.mxu0 %v293_v35  ;;  %915 = vmatmul.f32.gmra.mxu2 %v295_v36  ;;  %v328_v35 = vld [vmem:[%s1514_s30 + $0x338] sm:$0xff]  ;;  %v333_v41 = vld [vmem:[%s1514_s30 + $0x360] sm:$0xff] }
 0x114   : > { %850 = vmatmul.f32.gmra.mxu1 %v294_v42  ;;  %v335_v42 = vld [vmem:[%s1514_s30 + $0x370] sm:$0xff] }
 0x115   : > { %980 = vmatmul.f32.gmra.mxu3 %v296_v44  ;;  %v656_v45 = vpop.f32.mrf.mxu2 }
 0x116   : > { %v657_v46 = vadd.f32 %v656_v45, %v592_v43 }
 0x117   : > { %v529_v47 = vpop.f32.mrf.mxu0 }
 0x118   : > { %v530_v50 = vadd.f32 %v1588_v0, %v529_v47  ;;  %v721_v51 = vpop.f32.mrf.mxu3  ;;  %v334_v47 = vld [vmem:[%s1514_s30 + $0x368] sm:$0xff] }
 0x119   : > { %v1654_v53 = vadd.f32 %v721_v51, %v657_v46  ;;  %v594_v54 = vpop.f32.mrf.mxu1 }
 0x11a   : > { %v595_v56 = vadd.f32 %v594_v54, %v530_v50  ;;  %788 = vmatmul.f32.gmra.mxu0 %v301_v48  ;;  %918 = vmatmul.f32.gmra.mxu2 %v303_v49  ;;  %v336_v49 = vld [vmem:[%s1514_s30 + $0x378] sm:$0xff] }
 0x11c   : > { %853 = vmatmul.f32.gmra.mxu1 %v302_v55  ;;  %v341_v55 = vld [vmem:[%s1514_s30 + $0x3a0] sm:$0xff] }
 0x11d   : > { %983 = vmatmul.f32.gmra.mxu3 %v304_v57  ;;  %v659_v58 = vpop.f32.mrf.mxu2 }
 0x11e   : > { %v660_v59 = vadd.f32 %v659_v58, %v595_v56  ;;  %v343_v56 = vld [vmem:[%s1514_s30 + $0x3b0] sm:$0xff] }
 0x11f   : > { %v532_v60 = vpop.f32.mrf.mxu0 }
 0x120   : > { %v533_v63 = vadd.f32 %v1588_v0, %v532_v60  ;;  %v724_v2 = vpop.f32.mrf.mxu3 }
 0x121   : > { %v1661_v3 = vadd.f32 %v724_v2, %v660_v59  ;;  %v597_v4 = vpop.f32.mrf.mxu1 }
 0x122   : > { %v598_v6 = vadd.f32 %v597_v4, %v533_v63  ;;  %791 = vmatmul.f32.gmra.mxu0 %v309_v61  ;;  %921 = vmatmul.f32.gmra.mxu2 %v311_v62  ;;  %v342_v61 = vld [vmem:[%s1514_s30 + $0x3a8] sm:$0xff]  ;;  %v344_v63 = vld [vmem:[%s1514_s30 + $0x3b8] sm:$0xff] }
 0x124   : > { %856 = vmatmul.f32.gmra.mxu1 %v310_v5 }
 0x125   : > { %986 = vmatmul.f32.gmra.mxu3 %v312_v7  ;;  %v662_v8 = vpop.f32.mrf.mxu2  ;;  %v351_v7 = vld [vmem:[%s1514_s30 + $0x3f0] sm:$0xff] }
 0x126   : > { %v663_v9 = vadd.f32 %v662_v8, %v598_v6  ;;  %v349_v6 = vld [vmem:[%s1514_s30 + $0x3e0] sm:$0xff] }
 0x127   : > { %v535_v10 = vpop.f32.mrf.mxu0 }
 0x128   : > { %v536_v14 = vadd.f32 %v1588_v0, %v535_v10  ;;  %v727_v15 = vpop.f32.mrf.mxu3 }
 0x129   : > { %v1668_v17 = vadd.f32 %v727_v15, %v663_v9  ;;  %v600_v18 = vpop.f32.mrf.mxu1  ;;  %v352_v15 = vld [vmem:[%s1514_s30 + $0x3f8] sm:$0xff] }
 0x12a   : > { %v601_v20 = vadd.f32 %v600_v18, %v536_v14  ;;  %794 = vmatmul.f32.gmra.mxu0 %v317_v11  ;;  %924 = vmatmul.f32.gmra.mxu2 %v319_v12  ;;  %v350_v12 = vld [vmem:[%s1514_s30 + $0x3e8] sm:$0xff] }
 0x12c   : > { %859 = vmatmul.f32.gmra.mxu1 %v318_v19 }
 0x12d   : > { %989 = vmatmul.f32.gmra.mxu3 %v320_v21  ;;  %v665_v22 = vpop.f32.mrf.mxu2 }
 0x12e   : > { %v666_v23 = vadd.f32 %v665_v22, %v601_v20 }
 0x12f   : > { %v538_v24 = vpop.f32.mrf.mxu0 }
 0x130   : > { %v539_v29 = vadd.f32 %v1588_v0, %v538_v24  ;;  %v730_v30 = vpop.f32.mrf.mxu3 }
 0x131   : > { %v1675_v31 = vadd.f32 %v730_v30, %v666_v23  ;;  %v603_v32 = vpop.f32.mrf.mxu1 }
 0x132   : > { %v604_v34 = vadd.f32 %v603_v32, %v539_v29  ;;  %797 = vmatmul.f32.gmra.mxu0 %v325_v25  ;;  %927 = vmatmul.f32.gmra.mxu2 %v327_v27 }
 0x134   : > { %862 = vmatmul.f32.gmra.mxu1 %v326_v33 }
 0x135   : > { %992 = vmatmul.f32.gmra.mxu3 %v328_v35  ;;  %v668_v36 = vpop.f32.mrf.mxu2 }
 0x136   : > { %v669_v37 = vadd.f32 %v668_v36, %v604_v34 }
 0x137   : > { %v541_v38 = vpop.f32.mrf.mxu0 }
 0x138   : > { %v542_v43 = vadd.f32 %v1588_v0, %v541_v38  ;;  %v733_v44 = vpop.f32.mrf.mxu3 }
 0x139   : > { %v1682_v45 = vadd.f32 %v733_v44, %v669_v37  ;;  %v606_v46 = vpop.f32.mrf.mxu1 }
 0x13a   : > { %v607_v48 = vadd.f32 %v606_v46, %v542_v43  ;;  %800 = vmatmul.f32.gmra.mxu0 %v333_v41  ;;  %930 = vmatmul.f32.gmra.mxu2 %v335_v42 }
 0x13c   : > { %865 = vmatmul.f32.gmra.mxu1 %v334_v47 }
 0x13d   : > { %995 = vmatmul.f32.gmra.mxu3 %v336_v49  ;;  %v671_v50 = vpop.f32.mrf.mxu2 }
 0x13e   : > { %v672_v51 = vadd.f32 %v671_v50, %v607_v48 }
 0x13f   : > { %v544_v54 = vpop.f32.mrf.mxu0 }
 0x140   : > { %v545_v57 = vadd.f32 %v1588_v0, %v544_v54  ;;  %v736_v58 = vpop.f32.mrf.mxu3 }
 0x141   : > { %v1689_v59 = vadd.f32 %v736_v58, %v672_v51  ;;  %v609_v60 = vpop.f32.mrf.mxu1 }
 0x142   : > { %v610_v62 = vadd.f32 %v609_v60, %v545_v57  ;;  %803 = vmatmul.f32.gmra.mxu0 %v341_v55  ;;  %933 = vmatmul.f32.gmra.mxu2 %v343_v56 }
 0x144   : > { %868 = vmatmul.f32.gmra.mxu1 %v342_v61 }
 0x145   : > { %998 = vmatmul.f32.gmra.mxu3 %v344_v63  ;;  %v674_v2 = vpop.f32.mrf.mxu2 }
 0x146   : > { %v675_v4 = vadd.f32 %v674_v2, %v610_v62 }
 0x147   : > { %v547_v5 = vpop.f32.mrf.mxu0 }
 0x148   : > { %v548_v8 = vadd.f32 %v1588_v0, %v547_v5  ;;  %v739_v9 = vpop.f32.mrf.mxu3 }
 0x149   : > { %v1696_v10 = vadd.f32 %v739_v9, %v675_v4  ;;  %v612_v11 = vpop.f32.mrf.mxu1 }
 0x14a   : > { %v613_v14 = vadd.f32 %v612_v11, %v548_v8  ;;  %806 = vmatmul.f32.gmra.mxu0 %v349_v6  ;;  %936 = vmatmul.f32.gmra.mxu2 %v351_v7 }
 0x14c   : > { %871 = vmatmul.f32.gmra.mxu1 %v350_v12 }
 0x14d   : > { %1001 = vmatmul.f32.gmra.mxu3 %v352_v15  ;;  %v677_v18 = vpop.f32.mrf.mxu2 }
 0x14e   : > { %v678_v19 = vadd.f32 %v677_v18, %v613_v14 }
 0x14f   : > { %v762_v20 = vpop.f32.mrf.mxu0 }
 0x150   : > { %v742_v21 = vpop.f32.mrf.mxu3  ;;  %v763_v22 = vadd.f32 %v762_v20, %v1598_v16 }
 0x151   : > { %v1701_v23 = vadd.f32 %v742_v21, %v678_v19  ;;  %v827_v0 = vpop.f32.mrf.mxu1 }
 0x152   : > { %v828_v24 = vadd.f32 %v827_v0, %v763_v22 }
 0x155   : > { %v892_v25 = vpop.f32.mrf.mxu2 }
 0x156   : > { %v893_v27 = vadd.f32 %v892_v25, %v828_v24 }
 0x157   : > { %v765_v29 = vpop.f32.mrf.mxu0 }
 0x158   : > { %v766_v30 = vadd.f32 %v765_v29, %v1605_v28  ;;  %v957_v32 = vpop.f32.mrf.mxu3 }
 0x159   : > { %v958_v33 = vadd.f32 %v957_v32, %v893_v27  ;;  %v830_v34 = vpop.f32.mrf.mxu1 }
 0x15a   : > { %v831_v35 = vadd.f32 %v830_v34, %v766_v30 }
 0x15b   : > { %1005 = vst [vmem:[%s1705_s23] sm:$0xff] %v958_v33 }
 0x15d   : > { %v895_v16 = vpop.f32.mrf.mxu2 }
 0x15e   : > { %v896_v36 = vadd.f32 %v895_v16, %v831_v35 }
 0x15f   : > { %v768_v37 = vpop.f32.mrf.mxu0 }
 0x160   : > { %v769_v38 = vadd.f32 %v768_v37, %v1612_v40  ;;  %v960_v41 = vpop.f32.mrf.mxu3 }
 0x161   : > { %v961_v42 = vadd.f32 %v960_v41, %v896_v36  ;;  %v833_v43 = vpop.f32.mrf.mxu1 }
 0x162   : > { %v834_v28 = vadd.f32 %v833_v43, %v769_v38 }
 0x163   : > { %1006 = vst [vmem:[%s1705_s23 + $0x8] sm:$0xff] %v961_v42 }
 0x165   : > { %v898_v44 = vpop.f32.mrf.mxu2 }
 0x166   : > { %v899_v46 = vadd.f32 %v898_v44, %v834_v28 }
 0x167   : > { %v771_v47 = vpop.f32.mrf.mxu0 }
 0x168   : > { %v772_v48 = vadd.f32 %v771_v47, %v1619_v52  ;;  %v963_v49 = vpop.f32.mrf.mxu3 }
 0x169   : > { %v964_v50 = vadd.f32 %v963_v49, %v899_v46  ;;  %v836_v51 = vpop.f32.mrf.mxu1 }
 0x16a   : > { %v837_v54 = vadd.f32 %v836_v51, %v772_v48 }
 0x16b   : > { %1007 = vst [vmem:[%s1705_s23 + $0x10] sm:$0xff] %v964_v50 }
 0x16d   : > { %v901_v55 = vpop.f32.mrf.mxu2 }
 0x16e   : > { %v902_v56 = vadd.f32 %v901_v55, %v837_v54 }
 0x16f   : > { %v774_v40 = vpop.f32.mrf.mxu0 }
 0x170   : > { %v775_v57 = vadd.f32 %v774_v40, %v1626_v1  ;;  %v966_v58 = vpop.f32.mrf.mxu3 }
 0x171   : > { %v967_v60 = vadd.f32 %v966_v58, %v902_v56  ;;  %v839_v61 = vpop.f32.mrf.mxu1 }
 0x172   : > { %v840_v62 = vadd.f32 %v839_v61, %v775_v57 }
 0x173   : > { %1008 = vst [vmem:[%s1705_s23 + $0x18] sm:$0xff] %v967_v60 }
 0x175   : > { %v904_v63 = vpop.f32.mrf.mxu2 }
 0x176   : > { %v905_v2 = vadd.f32 %v904_v63, %v840_v62 }
 0x177   : > { %v777_v52 = vpop.f32.mrf.mxu0 }
 0x178   : > { %v778_v4 = vadd.f32 %v777_v52, %v1633_v13  ;;  %v969_v5 = vpop.f32.mrf.mxu3 }
 0x179   : > { %v970_v6 = vadd.f32 %v969_v5, %v905_v2  ;;  %v842_v7 = vpop.f32.mrf.mxu1 }
 0x17a   : > { %v843_v8 = vadd.f32 %v842_v7, %v778_v4 }
 0x17b   : > { %1009 = vst [vmem:[%s1705_s23 + $0x20] sm:$0xff] %v970_v6 }
 0x17d   : > { %v907_v9 = vpop.f32.mrf.mxu2 }
 0x17e   : > { %v908_v11 = vadd.f32 %v907_v9, %v843_v8 }
 0x17f   : > { %v780_v1 = vpop.f32.mrf.mxu0 }
 0x180   : > { %v781_v12 = vadd.f32 %v780_v1, %v1640_v26  ;;  %v972_v14 = vpop.f32.mrf.mxu3 }
 0x181   : > { %v973_v15 = vadd.f32 %v972_v14, %v908_v11  ;;  %v845_v18 = vpop.f32.mrf.mxu1 }
 0x182   : > { %v846_v19 = vadd.f32 %v845_v18, %v781_v12 }
 0x183   : > { %1010 = vst [vmem:[%s1705_s23 + $0x28] sm:$0xff] %v973_v15 }
 0x185   : > { %v910_v20 = vpop.f32.mrf.mxu2 }
 0x186   : > { %v911_v21 = vadd.f32 %v910_v20, %v846_v19 }
 0x187   : > { %v783_v13 = vpop.f32.mrf.mxu0 }
 0x188   : > { %v784_v22 = vadd.f32 %v783_v13, %v1647_v39  ;;  %v975_v0 = vpop.f32.mrf.mxu3 }
 0x189   : > { %v976_v24 = vadd.f32 %v975_v0, %v911_v21  ;;  %v848_v25 = vpop.f32.mrf.mxu1 }
 0x18a   : > { %v849_v27 = vadd.f32 %v848_v25, %v784_v22 }
 0x18b   : > { %1011 = vst [vmem:[%s1705_s23 + $0x30] sm:$0xff] %v976_v24 }
 0x18d   : > { %v913_v29 = vpop.f32.mrf.mxu2 }
 0x18e   : > { %v914_v30 = vadd.f32 %v913_v29, %v849_v27 }
 0x18f   : > { %v786_v26 = vpop.f32.mrf.mxu0 }
 0x190   : > { %v787_v32 = vadd.f32 %v786_v26, %v1654_v53  ;;  %v978_v33 = vpop.f32.mrf.mxu3 }
 0x191   : > { %v979_v34 = vadd.f32 %v978_v33, %v914_v30  ;;  %v851_v35 = vpop.f32.mrf.mxu1 }
 0x192   : > { %v852_v16 = vadd.f32 %v851_v35, %v787_v32 }
 0x193   : > { %1012 = vst [vmem:[%s1705_s23 + $0x38] sm:$0xff] %v979_v34 }
 0x195   : > { %v916_v36 = vpop.f32.mrf.mxu2 }
 0x196   : > { %v917_v37 = vadd.f32 %v916_v36, %v852_v16 }
 0x197   : > { %v789_v39 = vpop.f32.mrf.mxu0 }
 0x198   : > { %v790_v38 = vadd.f32 %v789_v39, %v1661_v3  ;;  %v981_v41 = vpop.f32.mrf.mxu3 }
 0x199   : > { %v982_v42 = vadd.f32 %v981_v41, %v917_v37  ;;  %v854_v43 = vpop.f32.mrf.mxu1 }
 0x19a   : > { %v855_v28 = vadd.f32 %v854_v43, %v790_v38 }
 0x19b   : > { %1013 = vst [vmem:[%s1705_s23 + $0x40] sm:$0xff] %v982_v42 }
 0x19d   : > { %v919_v44 = vpop.f32.mrf.mxu2 }
 0x19e   : > { %v920_v46 = vadd.f32 %v919_v44, %v855_v28 }
 0x19f   : > { %v792_v53 = vpop.f32.mrf.mxu0 }
 0x1a0   : > { %v793_v47 = vadd.f32 %v792_v53, %v1668_v17  ;;  %v984_v48 = vpop.f32.mrf.mxu3 }
 0x1a1   : > { %v985_v49 = vadd.f32 %v984_v48, %v920_v46  ;;  %v857_v50 = vpop.f32.mrf.mxu1 }
 0x1a2   : > { %v858_v51 = vadd.f32 %v857_v50, %v793_v47 }
 0x1a3   : > { %1014 = vst [vmem:[%s1705_s23 + $0x48] sm:$0xff] %v985_v49 }
 0x1a5   : > { %v922_v54 = vpop.f32.mrf.mxu2 }
 0x1a6   : > { %v923_v55 = vadd.f32 %v922_v54, %v858_v51 }
 0x1a7   : > { %v795_v3 = vpop.f32.mrf.mxu0 }
 0x1a8   : > { %v796_v56 = vadd.f32 %v795_v3, %v1675_v31  ;;  %v987_v40 = vpop.f32.mrf.mxu3 }
 0x1a9   : > { %v988_v57 = vadd.f32 %v987_v40, %v923_v55  ;;  %v860_v58 = vpop.f32.mrf.mxu1 }
 0x1aa   : > { %v861_v60 = vadd.f32 %v860_v58, %v796_v56 }
 0x1ab   : > { %1015 = vst [vmem:[%s1705_s23 + $0x50] sm:$0xff] %v988_v57 }
 0x1ad   : > { %v925_v61 = vpop.f32.mrf.mxu2 }
 0x1ae   : > { %v926_v62 = vadd.f32 %v925_v61, %v861_v60 }
 0x1af   : > { %v798_v17 = vpop.f32.mrf.mxu0 }
 0x1b0   : > { %v799_v63 = vadd.f32 %v798_v17, %v1682_v45  ;;  %v990_v2 = vpop.f32.mrf.mxu3 }
 0x1b1   : > { %v991_v52 = vadd.f32 %v990_v2, %v926_v62  ;;  %v863_v4 = vpop.f32.mrf.mxu1 }
 0x1b2   : > { %v864_v5 = vadd.f32 %v863_v4, %v799_v63 }
 0x1b3   : > { %1016 = vst [vmem:[%s1705_s23 + $0x58] sm:$0xff] %v991_v52 }
 0x1b5   : > { %v928_v6 = vpop.f32.mrf.mxu2 }
 0x1b6   : > { %v929_v7 = vadd.f32 %v928_v6, %v864_v5 }
 0x1b7   : > { %v801_v31 = vpop.f32.mrf.mxu0 }
 0x1b8   : > { %v802_v8 = vadd.f32 %v801_v31, %v1689_v59  ;;  %v993_v9 = vpop.f32.mrf.mxu3 }
 0x1b9   : > { %v994_v11 = vadd.f32 %v993_v9, %v929_v7  ;;  %v866_v1 = vpop.f32.mrf.mxu1 }
 0x1ba   : > { %v867_v12 = vadd.f32 %v866_v1, %v802_v8 }
 0x1bb   : > { %1017 = vst [vmem:[%s1705_s23 + $0x60] sm:$0xff] %v994_v11 }
 0x1bd   : > { %v931_v14 = vpop.f32.mrf.mxu2 }
 0x1be   : > { %v932_v15 = vadd.f32 %v931_v14, %v867_v12 }
 0x1bf   : > { %v804_v45 = vpop.f32.mrf.mxu0 }
 0x1c0   : > { %v805_v18 = vadd.f32 %v804_v45, %v1696_v10  ;;  %v996_v19 = vpop.f32.mrf.mxu3 }
 0x1c1   : > { %v997_v20 = vadd.f32 %v996_v19, %v932_v15  ;;  %v869_v21 = vpop.f32.mrf.mxu1 }
 0x1c2   : > { %v870_v13 = vadd.f32 %v869_v21, %v805_v18 }
 0x1c3   : > { %1018 = vst [vmem:[%s1705_s23 + $0x68] sm:$0xff] %v997_v20 }
 0x1c5   : > { %v934_v22 = vpop.f32.mrf.mxu2 }
 0x1c6   : > { %v935_v59 = vadd.f32 %v934_v22, %v870_v13 }
 0x1c7   : > { %v807_v0 = vpop.f32.mrf.mxu0 }
 0x1c8   : > { %v808_v24 = vadd.f32 %v807_v0, %v1701_v23  ;;  %v999_v25 = vpop.f32.mrf.mxu3 }
 0x1c9   : > { %v1000_v27 = vadd.f32 %v999_v25, %v935_v59  ;;  %v872_v29 = vpop.f32.mrf.mxu1 }
 0x1ca   : > { %v873_v10 = vadd.f32 %v872_v29, %v808_v24 }
 0x1cb   : > { %1019 = vst [vmem:[%s1705_s23 + $0x70] sm:$0xff] %v1000_v27 }
 0x1cd   : > { %v937_v30 = vpop.f32.mrf.mxu2 }
 0x1ce   : > { %v938_v26 = vadd.f32 %v937_v30, %v873_v10 }
 0x1d0   : > { %v1002_v32 = vpop.f32.mrf.mxu3 }
 0x1d1   : > { %v1003_v33 = vadd.f32 %v1002_v32, %v938_v26 }
 0x1d3   : > { %1020 = vst [vmem:[%s1705_s23 + $0x78] sm:$0xff] %v1003_v33 }
 0x1d4   : > { %1342 = shalt.err (!%p1339_p10)
}
 0x1d5   : > { %s1393_s22 = smov 128   ;;  %s1394_s25 = smov 8  }
 0x1d6   : > { %1161 = dma.vmem_to_hbm [thread:$0]  (%p1480_p0), %s1035_s4, 2048, %s1037_s5, %s1022_s16, %s1393_s22, %s1393_s22, %s1394_s25  }
 0x1d7 PF: > { %p1183_p11 = scmp.ge.s32.totalorder %s1385_s15, 2  ;;  %s1051_s30 = sand.u32 1, %s1373_s12  }
 0x1d8   : > { %s1052_s18 = scalar_lea.sflag [#allocation4], %s1051_s30 }
 0x1d9   : > { %p1175_p12 = pnand %p1183_p11, %p1450_p6 }
 0x1db   : > { %p1176_p13 = pneg %p1175_p12 }
 0x1dd   : > { %1368 = dma.done.wait (%p1176_p13), %s1052_s18, 2048  }
 0x1de   : > { %1370 = vsyncadd (%p1176_p13), %s1052_s18, 4294965248  ;;  %p17_p3 = scmp.ge.s32.totalorder %s1470_s6, 6   ;;  %s1779_s12 = smov %s1377_s13 }
 0x1df   : > { %s1780_s13 = smov %s1381_s14  ;;  %s1781_s14 = smov %s1486_s10 }
 0x1e0   : > { %s1782_s15 = smov %s1470_s6  ;;  %19 = sbr.rel (!%p17_p3) target bundleno = 6 (0x6), region = 85 }
 0x1e5   :  { %1058 = vsyncpa [#allocation3], 1 }
 0x1e6   :  { %1060 = vsyncpa [#allocation3 + $0x1], 1 }
 0x1e7   :  { %1061 = vsyncpa [#allocation6], 1 }
 0x1e8   :  { %1062 = vsyncpa [#allocation4], 1 }
 0x1e9   :  { %1064 = vsyncpa [#allocation4 + $0x1], 1 }

</bundles_post_ra>
